<compile_context>
chip_gen: v6e
topology: v6e:2x2x1
jax: 0.10.0
libtpu: 0.0.40
codegen_flags: <defaults>
</compile_context>

<pallas_src>
import math
import functools

import jax
import jax.numpy as jnp
from jax import lax
from jax.experimental import pallas as pl
from jax.experimental.pallas import tpu as pltpu


def _arc_margin_kernel(xn_ref, w_ref, inv_wn_ref, label_ref, o_ref, *,
                       s, cos_m, sin_m, th, mm, easy_margin, block_n):
    """One class-tile of the ArcFace forward.

    xn_ref     : (B, D)   L2-normalized input rows, f32, VMEM-resident
    w_ref      : (TN, D)  raw weight tile in native (out, in) layout (streamed)
    inv_wn_ref : (1, TN)  precomputed 1/||w_j||, f32 (streamed, tiny)
    label_ref  : (B, 1)   int32 target class per row, VMEM-resident
    o_ref      : (B, TN)  output logits tile (lane-dense stores)
    """
    j = pl.program_id(0)

    xn = xn_ref[...]
    w = w_ref[...]
    if w.dtype != xn.dtype:
        w = w.astype(xn.dtype)  # bf16 -> f32 upcast rides idle VPU slots under the DMA

    # (B, D) x (TN, D)^T contraction on the MXU with f32 accumulation.  Native
    # (out, in) layout means no transposed weight copy in HBM.
    raw = lax.dot_general(xn, w, (((1,), (1,)), ((), ())),
                          preferred_element_type=jnp.float32)          # (B, TN)

    # x is unit-norm and 1/||w_j|| is precomputed -> cosine is one broadcast mul.
    cosine = raw * inv_wn_ref[...]

    sine = jnp.sqrt(jnp.clip(1.0 - cosine * cosine, 0.0, 1.0))
    phi = cosine * cos_m - sine * sin_m
    if easy_margin:
        phi = jnp.where(cosine > 0.0, phi, cosine)
    else:
        phi = jnp.where(cosine > th, phi, cosine - mm)

    # one_hot.scatter_(1, label, 1) == (global class index == label); the iota
    # is offset by this tile's starting class.
    class_idx = lax.broadcasted_iota(jnp.int32, cosine.shape, 1) + j * block_n
    out = jnp.where(class_idx == label_ref[...], phi, cosine) * s
    o_ref[...] = out.astype(o_ref.dtype)


def _vmem_budget_bytes():
    """Per-generation scoped-VMEM target (v5e/v6e: 128 MiB physical, v7x: 64 MiB)."""
    cap = None
    try:
        cap = getattr(pltpu.get_tpu_info(), "vmem_capacity_bytes", None)
    except Exception:
        cap = None
    if not cap:
        cap = 64 * 1024 * 1024  # conservative fallback (v7x physical)
    # ~70% of physical, clamped to [32 MiB, 100 MiB]
    return int(min(max((cap * 7) // 10, 32 * 1024 * 1024), 100 * 1024 * 1024))


def arc_margin_product(x, weight, label, *, s=30.0, m=0.5, easy_margin=False,
                       block_n=2048, weight_dtype=jnp.bfloat16):
    """x: (B, D) f32, weight: (N, D), label: (B,) int -> (B, N) f32 logits.

    weight_dtype: streaming dtype for the weight (default bf16 halves the
    dominant HBM read; accumulation stays f32).  Pass jnp.float32 (or None to
    use weight.dtype) for bit-tight results.  Note: the bf16 cast is worth it
    when amortized (persistent Parameter / per-training-step) or when the
    weight is already stored in bf16.
    """
    B, D = x.shape
    N, D2 = weight.shape
    assert D == D2, "feature dims must match"
    w_dtype = jnp.dtype(weight_dtype) if weight_dtype is not None else jnp.dtype(weight.dtype)

    # ---- tiny host-side prep (XLA fuses norm + cast into one pass) ----------
    eps = 1e-12
    x32 = x.astype(jnp.float32)
    inv_xn = lax.rsqrt(jnp.maximum(jnp.sum(x32 * x32, axis=1, keepdims=True),
                                   eps * eps))
    xn = x32 * inv_xn                                  # F.normalize(input), f32

    w32 = weight.astype(jnp.float32)
    inv_wn = lax.rsqrt(jnp.maximum(jnp.sum(w32 * w32, axis=1),
                                   eps * eps)).reshape(1, N)   # 1/||w_j||, f32
    w_stream = weight if weight.dtype == w_dtype else weight.astype(w_dtype)
    label2d = label.reshape(B, 1).astype(jnp.int32)

    # ---- per-generation VMEM budget and class-tile size ----------------------
    vmem_limit = _vmem_budget_bytes()
    tile_budget = (vmem_limit * 4) // 5                # headroom for compiler scratch
    b_pad = max(B, 8)

    def tile_bytes(tn):
        w_tiles = 2 * tn * D * w_dtype.itemsize                 # double-buffered weight
        w_up = tn * D * 4 if w_dtype != jnp.float32 else 0      # in-kernel f32 upcast
        inv_tiles = 2 * 8 * tn * 4                              # (1, tn) padded to 8 sublanes
        out_tiles = 2 * b_pad * tn * 4                          # double-buffered output
        xn_buf = 2 * b_pad * D * 4                              # resident input, 2 buffers
        lab_buf = 2 * b_pad * 128 * 4                           # (B, 1) padded to a lane
        epilogue = 5 * b_pad * tn * 4                           # cosine/sine/phi/iota/out
        return w_tiles + w_up + inv_tiles + out_tiles + xn_buf + lab_buf + epilogue

    if N <= 128:
        block_n = N
    else:
        block_n = max(128, (min(block_n, N) // 128) * 128)
        # keep >= 4 grid steps for v7x megacore pipelining when N allows it
        if N >= 4 * 512:
            block_n = min(block_n, max(512, ((N // 4) // 128) * 128))
        while block_n > 128 and tile_bytes(block_n) > tile_budget:
            block_n = max(128, ((block_n // 2) // 128) * 128)

    grid = (pl.cdiv(N, block_n),)

    kernel = functools.partial(
        _arc_margin_kernel,
        s=float(s),
        cos_m=math.cos(m),
        sin_m=math.sin(m),
        th=math.cos(math.pi - m),
        mm=math.sin(math.pi - m) * m,
        easy_margin=bool(easy_margin),
        block_n=int(block_n),
    )

    cost = pl.CostEstimate(
        flops=2 * B * N * D,
        transcendentals=B * N,
        bytes_accessed=(N * D * w_dtype.itemsize + N * 4 + B * N * 4
                        + B * D * 4 + B * 4),
    )

    return pl.pallas_call(
        kernel,
        out_shape=jax.ShapeDtypeStruct((B, N), jnp.float32),
        grid=grid,
        in_specs=[
            pl.BlockSpec((B, D), lambda j: (0, 0)),           # resident xn (f32)
            pl.BlockSpec((block_n, D), lambda j: (j, 0)),     # streamed weight, native layout
            pl.BlockSpec((1, block_n), lambda j: (0, j)),     # streamed 1/||w_j||
            pl.BlockSpec((B, 1), lambda j: (0, 0)),           # resident label
        ],
        out_specs=pl.BlockSpec((B, block_n), lambda j: (0, j)),
        compiler_params=pltpu.CompilerParams(
            dimension_semantics=("parallel",),                # megacore on v7x
            vmem_limit_bytes=int(vmem_limit)),
        cost_estimate=cost,
    )(xn, w_stream, inv_wn, label2d)


def reference_arc_margin(x, weight, label, *, s=30.0, m=0.5, easy_margin=False):
    """Pure-JAX reference matching the PyTorch module."""
    eps = 1e-12
    xn = x / jnp.maximum(jnp.linalg.norm(x, axis=1, keepdims=True), eps)
    wn = weight / jnp.maximum(jnp.linalg.norm(weight, axis=1, keepdims=True), eps)
    cosine = xn @ wn.T
    sine = jnp.sqrt(jnp.clip(1.0 - cosine ** 2, 0.0, 1.0))
    phi = cosine * math.cos(m) - sine * math.sin(m)
    if easy_margin:
        phi = jnp.where(cosine > 0.0, phi, cosine)
    else:
        phi = jnp.where(cosine > math.cos(math.pi - m),
                        phi, cosine - math.sin(math.pi - m) * m)
    one_hot = jax.nn.one_hot(label, weight.shape[0], dtype=cosine.dtype)
    return (one_hot * phi + (1.0 - one_hot) * cosine) * s


if __name__ == "__main__":
    # Small shapes consistent with the module: batch=8, in_features=128,
    # out_features (num classes) = 512 so a forced block_n=128 run exercises a
    # multi-tile class grid (and the per-tile iota offset).
    B, IN_FEATURES, OUT_FEATURES = 8, 128, 512

    key = jax.random.PRNGKey(0)
    kx, kw, kl = jax.random.split(key, 3)

    x = jax.random.normal(kx, (B, IN_FEATURES), dtype=jnp.float32)

    # Deterministic xavier_uniform_-style init for weight (out, in).
    bound = math.sqrt(6.0 / (IN_FEATURES + OUT_FEATURES))
    weight = jax.random.uniform(kw, (OUT_FEATURES, IN_FEATURES),
                                dtype=jnp.float32, minval=-bound, maxval=bound)

    label = jax.random.randint(kl, (B,), 0, OUT_FEATURES, dtype=jnp.int32)

    ref = reference_arc_margin(x, weight, label, s=30.0, m=0.5, easy_margin=False)

    # f32 weight streaming, forced multi-tile class grid (tight tolerance).
    out_f32 = arc_margin_product(x, weight, label, s=30.0, m=0.5,
                                 easy_margin=False, block_n=128,
                                 weight_dtype=jnp.float32)
    out_f32 = jax.block_until_ready(out_f32)
    assert out_f32.shape == (B, OUT_FEATURES)
    assert jnp.allclose(out_f32, ref, atol=1e-3, rtol=1e-3), "f32 mismatch vs reference"

    # Default path: bf16 weight streaming, auto block_n / auto VMEM budget.
    # Results differ at the bf16 level -> compare in cosine units.
    out_def = arc_margin_product(x, weight, label, s=30.0, m=0.5,
                                 easy_margin=False)
    out_def = jax.block_until_ready(out_def)
    assert out_def.shape == (B, OUT_FEATURES)
    assert float(jnp.max(jnp.abs(out_def - ref))) / 30.0 < 5e-2, "bf16 mismatch vs reference"

    print("KERNEL_OK")
</pallas_src>

<mosaic_0001>
module attributes {stable_mosaic.version = 11 : i64} {
  func.func @_arc_margin_kernel(%arg0: i32, %arg1: memref<8x128xf32, #tpu.memory_space<vmem>>, %arg2: memref<128x128xf32, #tpu.memory_space<vmem>>, %arg3: memref<1x128xf32, #tpu.memory_space<vmem>>, %arg4: memref<8x1xi32, #tpu.memory_space<vmem>>, %arg5: memref<8x128xf32, #tpu.memory_space<vmem>>) attributes {dimension_semantics = [#tpu.dimension_semantics<parallel>], iteration_bounds = array<i64: 4>, scalar_prefetch = 0 : i64, scratch_operands = 0 : i64, tpu.core_type = #tpu.core_type<tc>, window_params = [{pipeline_mode = #tpu.pipeline_mode<synchronous>, transform_indices = @transform_0, window_bounds = array<i64: 8, 128>}, {transform_indices = @transform_1, window_bounds = array<i64: 128, 128>}, {transform_indices = @transform_2, window_bounds = array<i64: 1, 128>}, {pipeline_mode = #tpu.pipeline_mode<synchronous>, transform_indices = @transform_3, window_bounds = array<i64: 8, 1>}, {transform_indices = @transform_4, window_bounds = array<i64: 8, 128>}]} {
    %c0 = arith.constant 0 : index
    %c0_0 = arith.constant 0 : index
    %0 = vector.load %arg1[%c0, %c0_0] : memref<8x128xf32, #tpu.memory_space<vmem>>, vector<8x128xf32>
    %c0_1 = arith.constant 0 : index
    %c0_2 = arith.constant 0 : index
    %1 = vector.load %arg2[%c0_1, %c0_2] : memref<128x128xf32, #tpu.memory_space<vmem>>, vector<128x128xf32>
    %cst = arith.constant dense<0.000000e+00> : vector<8x128xf32>
    %2 = tpu.matmul %0, %1, %cst {dimension_numbers = #tpu.dot_dimension_numbers<[1], [1], [0], [0], [0, 0, 1, 0], [], []>} : vector<8x128xf32>, vector<128x128xf32>, vector<8x128xf32> -> vector<8x128xf32>
    %c0_3 = arith.constant 0 : index
    %c0_4 = arith.constant 0 : index
    %3 = vector.load %arg3[%c0_3, %c0_4] : memref<1x128xf32, #tpu.memory_space<vmem>>, vector<1x128xf32>
    %4 = vector.broadcast %3 : vector<1x128xf32> to vector<8x128xf32>
    %5 = arith.mulf %2, %4 : vector<8x128xf32>
    %6 = arith.mulf %5, %5 : vector<8x128xf32>
    %cst_5 = arith.constant 1.000000e+00 : f32
    %7 = vector.broadcast %cst_5 : f32 to vector<8x128xf32>
    %8 = arith.subf %7, %6 : vector<8x128xf32>
    %cst_6 = arith.constant 0.000000e+00 : f32
    %cst_7 = arith.constant 1.000000e+00 : f32
    %9 = vector.broadcast %cst_6 : f32 to vector<8x128xf32>
    %10 = arith.maximumf %9, %8 : vector<8x128xf32>
    %11 = vector.broadcast %cst_7 : f32 to vector<8x128xf32>
    %12 = arith.minimumf %11, %10 : vector<8x128xf32>
    %13 = math.sqrt %12 : vector<8x128xf32>
    %cst_8 = arith.constant 0.87758255 : f32
    %14 = vector.broadcast %cst_8 : f32 to vector<8x128xf32>
    %15 = arith.mulf %5, %14 : vector<8x128xf32>
    %cst_9 = arith.constant 0.47942555 : f32
    %16 = vector.broadcast %cst_9 : f32 to vector<8x128xf32>
    %17 = arith.mulf %13, %16 : vector<8x128xf32>
    %18 = arith.subf %15, %17 : vector<8x128xf32>
    %cst_10 = arith.constant -0.87758255 : f32
    %19 = vector.broadcast %cst_10 : f32 to vector<8x128xf32>
    %20 = arith.cmpf ogt, %5, %19 : vector<8x128xf32>
    %cst_11 = arith.constant 0.239712775 : f32
    %21 = vector.broadcast %cst_11 : f32 to vector<8x128xf32>
    %22 = arith.subf %5, %21 : vector<8x128xf32>
    %23 = arith.select %20, %18, %22 : vector<8x128xi1>, vector<8x128xf32>
    %24 = tpu.iota {dimensions = array<i32: 1>} : vector<8x128xi32>
    %c128_i32 = arith.constant 128 : i32
    %25 = arith.muli %arg0, %c128_i32 : i32
    %26 = vector.broadcast %25 : i32 to vector<8x128xi32>
    %27 = arith.addi %24, %26 : vector<8x128xi32>
    %c0_12 = arith.constant 0 : index
    %c0_13 = arith.constant 0 : index
    %28 = vector.load %arg4[%c0_12, %c0_13] : memref<8x1xi32, #tpu.memory_space<vmem>>, vector<8x1xi32>
    %29 = vector.broadcast %28 : vector<8x1xi32> to vector<8x128xi32>
    %30 = arith.cmpi eq, %27, %29 : vector<8x128xi32>
    %31 = arith.select %30, %23, %5 : vector<8x128xi1>, vector<8x128xf32>
    %cst_14 = arith.constant 3.000000e+01 : f32
    %32 = vector.broadcast %cst_14 : f32 to vector<8x128xf32>
    %33 = arith.mulf %31, %32 : vector<8x128xf32>
    %c0_15 = arith.constant 0 : index
    %c0_16 = arith.constant 0 : index
    %34 = vector.load %arg5[%c0_15, %c0_16] : memref<8x128xf32, #tpu.memory_space<vmem>>, vector<8x128xf32>
    tpu.vector_store %arg5[%c0_15, %c0_16], %33 {strides = array<i32>} : memref<8x128xf32, #tpu.memory_space<vmem>>, vector<8x128xf32>,
    return
  }
  func.func @transform_0(%arg0: i32) -> (i32, i32) {
    %c0_i32 = arith.constant 0 : i32
    %c0_i32_0 = arith.constant 0 : i32
    %c0_i32_1 = arith.constant 0 : i32
    return %c0_i32, %c0_i32_0 : i32, i32
  }
  func.func @transform_1(%arg0: i32) -> (i32, i32) {
    %c0_i32 = arith.constant 0 : i32
    %c0_i32_0 = arith.constant 0 : i32
    return %arg0, %c0_i32 : i32, i32
  }
  func.func @transform_2(%arg0: i32) -> (i32, i32) {
    %c0_i32 = arith.constant 0 : i32
    %c0_i32_0 = arith.constant 0 : i32
    return %c0_i32, %arg0 : i32, i32
  }
  func.func @transform_3(%arg0: i32) -> (i32, i32) {
    %c0_i32 = arith.constant 0 : i32
    %c0_i32_0 = arith.constant 0 : i32
    %c0_i32_1 = arith.constant 0 : i32
    return %c0_i32, %c0_i32_0 : i32, i32
  }
  func.func @transform_4(%arg0: i32) -> (i32, i32) {
    %c0_i32 = arith.constant 0 : i32
    %c0_i32_0 = arith.constant 0 : i32
    return %c0_i32, %arg0 : i32, i32
  }
}

</mosaic_0001>

<bundles_post_ra>
// kernel: tpu_custom_call.1
= control target key start
LH: loop header
LB: loop body
LE: loop exit
PB: predicated region body
PF: predicated region fallthrough
CT: control target
= control target key end

     0   :  { %9 = vsyncpa [#allocation3], 0  ;;  %s872_s0 = inlined_call_operand.vmem [shape: f32[8,128], index: 0, kind: input, shape index: {}]   ;;  %s873_s1 = inlined_call_operand.hbm [shape: f32[512,128], index: 1, kind: input, shape index: {}]   ;;  %s874_s2 = inlined_call_operand.vmem [shape: f32[1,512], index: 2, kind: input, shape index: {}]   ;;  %s875_s3 = inlined_call_operand.vmem [shape: s32[8,1], index: 3, kind: input, shape index: {}]   ;;  %s876_s4 = inlined_call_operand.hbm [shape: f32[8,512], index: 4, kind: output, shape index: {}]  }
   0x1   :  { %11 = vsyncpa [#allocation3 + $0x1], 0 }
   0x2   :  { %12 = vsyncpa [#allocation4], 0 }
   0x3   :  { %14 = vsyncpa [#allocation4 + $0x1], 0  ;;  %s698_s15 = smov 0   ;;  %s700_s16 = smov 0  }
   0x4   :  { %s702_s17 = smov 0   ;;  %s704_s18 = smov 0  }
   0x5 LB: > { %s719_s19 = sadd.s32 4294967295, %s664_s18   ;;  %s449_s20 = sadd.s32 4294967294, %s664_s18   ;;  %s664_s18 = sphi %s704_s18, %s890_s18   ;;  %s660_s17 = sphi %s702_s17, %s889_s17   ;;  %s656_s16 = sphi %s700_s16, %s888_s16   ;;  %s652_s15 = sphi %s698_s15, %s887_s15  }
   0x6   : > { %s723_s21 = sadd.s32 1, %s664_s18   ;;  %s48_s22 = sadd.s32 1, %s660_s17 }
   0x7   : > { %s45_s23 = ssub.s32 %s664_s18, %s723_s21  ;;  %p55_p0 = scmp.ne.s32.totalorder %s660_s17, %s656_s16 }
   0x8   : > { %p46_p1 = scmp.eq.s32.totalorder %s45_s23, 0  ;;  %p56_p2 = scmp.eq.s32.totalorder %s664_s18, 0 }
   0x9   : > { %p61_p3 = scmp.ne.s32.totalorder %s656_s16, %s652_s15  ;;  %p62_p4 = scmp.eq.s32.totalorder %s719_s19, 0 }
   0xa   : > { %s735_s24 = scalar_select %p46_p1, %s660_s17, %s48_s22  }
   0xb   : > { %p737_p5 = por %p56_p2, %p55_p0  ;;  %p741_p6 = por %p62_p4, %p61_p3 }
   0xc   : > { %p132_p7 = scmp.eq.s32.totalorder %s719_s19, 3  ;;  %p138_p8 = scmp.eq.s32.totalorder %s449_s20, 3 }
   0xd   : > { %s880_s26 = scalar_select %p741_p6, 1, 0 }
   0xe   : > { %p530_p9 = scmp.lt.s32.totalorder %s664_s18, 4  ;;  %p747_p10 = por %p132_p7, %p55_p0 }
   0xf   : > { %p751_p11 = por %p138_p8, %p61_p3  ;;  %s164_s29 = sand.u32 1, %s660_s17  }
  0x10   : > { %s881_s27 = scalar_select %p747_p10, 1, 0 }
  0x11   : > { %s882_s28 = scalar_select %p751_p11, 1, 0 }
  0x12   : > { %s465_s30 = sshll.u32 %s664_s18, 11  ;;  %s452_s5 = sshll.u32 %s164_s29, 7 }
  0x13   : > { %s760_s8 = scalar_lea.hbm %s873_s1, %s465_s30  ;;  %s168_s9 = scalar_lea.vmem [#allocation2], %s452_s5 }
  0x14   : > { %s175_s10 = sshll.u32 %s168_s9, 4  ;;  %p764_p12 = pnand %p530_p9, %p737_p5  ;;  %s768_s10 = int_to_ptr.vmem [resolvable:$true] %s175_s10 }
  0x15   : > { %s770_s12 = scalar_lea.sflag [#allocation3], %s164_s29  ;;  %s572_s13 = scalar_lea.hbm %s760_s8, 2048 }
  0x16   : > { %p573_p13 = scmp.ne.s32.totalorder %s760_s8, %s572_s13  ;;  %p574_p0 = pneg %p764_p12 }
  0x17   : > { %s577_s22 = scalar_lea.hbm %s873_s1, 8192  ;;  %p578_p3 = scmp.lt.s32.totalorder %s760_s8, %s873_s1 }
  0x18   : > { %p575_p1 = pnand %p574_p0, %p573_p13  ;;  %p579_p4 = scmp.lt.s32.totalorder %s577_s22, %s572_s13 }
  0x1a   : > { %p576_p2 = pneg %p575_p1  ;;  %p580_p5 = por %p579_p4, %p578_p3 }
  0x1c   : > { %p581_p7 = pnand %p580_p5, %p576_p2 }
  0x1e   : > { %584 = shalt.err (!%p581_p7)
}
  0x1f   : > { %s585_s29 = scalar_lea.vmem %s768_s10, 2048  ;;  %s666_s30 = smov [#allocation2]  }
  0x20   : > { %p586_p8 = scmp.ne.s32.totalorder %s768_s10, %s585_s29  ;;  %s590_s5 = sshll.u32 %s666_s30, 4  ;;  %s591_s5 = int_to_ptr.vmem [resolvable:$false] %s590_s5 }
  0x21   : > { %s592_s6 = scalar_lea.vmem %s591_s5, 4096  ;;  %p593_p1 = scmp.lt.s32.totalorder %s768_s10, %s591_s5 }
  0x22   : > { %p588_p9 = pnand %p586_p8, %p574_p0  ;;  %p594_p11 = scmp.lt.s32.totalorder %s592_s6, %s585_s29 }
  0x24   : > { %p589_p13 = pneg %p588_p9  ;;  %p595_p10 = por %p594_p11, %p593_p1 }
  0x26   : > { %p596_p6 = pnand %p595_p10, %p589_p13 }
  0x28   : > { %599 = shalt.err (!%p596_p6)
}
  0x29   : > { %s667_s7 = smov 128   ;;  %s668_s9 = smov 8  }
  0x2a   : > { %525 = dma.hbm_to_vmem [thread:$0]  (!%p764_p12), %s760_s8, 2048, %s768_s10, %s770_s12, %s667_s7, %s667_s7, %s668_s9  }
  0x2b   : > { %p455_p0 = scmp.ge.s32.totalorder %s664_s18, 1  ;;  %p189_p2 = scmp.lt.s32.totalorder %s664_s18, 5 }
  0x2d   : > { %p190_p3 = pnand %p455_p0, %p189_p2 }
  0x2e   : > { %s794_s13 = sand.u32 (!%p190_p3), 1, %s656_s16   ;;  %p884_p6 = scmp.ne.s32.totalorder (!%p190_p3), %s880_s26, 0 }
  0x2f   : > { %193 = sbr.rel (%p190_p3) target bundleno = 360 (0x168), region = 36  ;;  %s456_s14 = sshll.u32 (!%p190_p3), %s794_s13, 7 }
  0x30   : > { %s196_s20 = scalar_lea.sflag (!%p190_p3), [#allocation3], %s794_s13  ;;  %s798_s22 = scalar_lea.vmem (!%p190_p3), [#allocation2], %s456_s14 }
  0x34   : > { %643 = dma.done.wait (%p884_p6), %s196_s20, 2048  }
  0x35   : > { %645 = vsyncadd (%p884_p6), %s196_s20, 4294965248  ;;  %v669_v0 = vmov 0.0   ;;  %vm670_vm0 = vmmov 0   ;;  %v671_v1 = vmov 0   ;;  %v247_v2 = vld [vmem:[%s798_s22 + $0x78] sm:$0xff]  ;;  %v246_v3 = vld [vmem:[%s798_s22 + $0x70] sm:$0xff]  ;;  %v343_v28 = vlaneseq }
  0x36   : > { %483 = vmatprep.subr.mxu0 %v669_v0  ;;  %515 = vmatprep.mubr.msk.f32.mxu0 %vm670_vm0, %v669_v0  ;;  %v348_v4 = vld [vmem:[%s875_s3] sm:$0xff]  ;;  %v245_v5 = vld [vmem:[%s798_s22 + $0x68] sm:$0xff]  ;;  %v243_v7 = vld [vmem:[%s798_s22 + $0x58] sm:$0xff]  ;;  %p228_p10 = scmp.lt.s32.totalorder %s719_s19, 3  ;;  %s460_s30 = sshll.u32 %s719_s19, 7 }
  0x37   : > { %569 = vset.pattern.permute.xlu0 %v671_v1  ;;  %484 = vmatpush3.xpose.msra.mxu0 %v247_v2  ;;  %v244_v6 = vld [vmem:[%s798_s22 + $0x60] sm:$0xff]  ;;  %v242_v8 = vld [vmem:[%s798_s22 + $0x50] sm:$0xff]  ;;  %v241_v9 = vld [vmem:[%s798_s22 + $0x48] sm:$0xff]  ;;  %v344_v29 = vand.u32 127, %v343_v28  ;;  %v346_v31 = vstv %s460_s30  ;;  %s457_s5 = sshll.u32 %s794_s13, 3  ;;  %s836_s14 = scalar_lea.hbm %s876_s4, %s460_s30 }
  0x38   : > { %485 = vmatprep.subr.mxu0 %v669_v0  ;;  %350 = vperm.xlu0 %569, %v348_v4   ;;  %v240_v10 = vld [vmem:[%s798_s22 + $0x40] sm:$0xff]  ;;  %v239_v11 = vld [vmem:[%s798_s22 + $0x38] sm:$0xff]  ;;  %v238_v12 = vld [vmem:[%s798_s22 + $0x30] sm:$0xff]  ;;  %s229_s12 = scalar_select %p228_p10, %s719_s19, 3 }
  0x39   : > { %v237_v13 = vld [vmem:[%s798_s22 + $0x28] sm:$0xff]  ;;  %v236_v14 = vld [vmem:[%s798_s22 + $0x20] sm:$0xff]  ;;  %v235_v15 = vld [vmem:[%s798_s22 + $0x18] sm:$0xff]  ;;  %v347_v34 = vadd.s32 %v346_v31, %v344_v29  ;;  %s226_s19 = scalar_lea.vmem [#allocation5], %s457_s5  ;;  %s357_s20 = scalar_lea.sflag [#allocation4], %s794_s13 }
  0x3a   : > { %v234_v16 = vld [vmem:[%s798_s22 + $0x10] sm:$0xff]  ;;  %v233_v17 = vld [vmem:[%s798_s22 + $0x8] sm:$0xff]  ;;  %v232_v18 = vld [vmem:[%s798_s22] sm:$0xff]  ;;  %s230_s29 = scalar_lea.vmem %s874_s2, %s229_s12  ;;  %s370_s6 = sshll.u32 %s226_s19, 4  ;;  %s371_s6 = int_to_ptr.vmem [resolvable:$true] %s370_s6 }
  0x3b   : > { %486 = vmatpush3.xpose.msra.mxu0 %v246_v3  ;;  %v231_v19 = vld [vmem:[%s872_s0] sm:$0xff]  ;;  %s600_s22 = scalar_lea.vmem %s371_s6, 128  ;;  %p885_p12 = scmp.ne.s32.totalorder %s881_s27, 0 }
  0x3c   : > { %487 = vmatprep.subr.mxu0 %v669_v0  ;;  %v458_v20 = vld [vmem:[%s230_s29] ss:$0 sm:$0xff]  ;;  %p601_p11 = scmp.ne.s32.totalorder %s371_s6, %s600_s22  ;;  %s672_s8 = smov [#allocation5]  }
  0x3d   : > { %s604_s26 = sshll.u32 %s672_s8, 4  ;;  %s605_s26 = int_to_ptr.vmem [resolvable:$false] %s604_s26 }
  0x3e   : > { %p602_p4 = pnand %p601_p11, %p885_p12  ;;  %s606_s10 = scalar_lea.vmem %s605_s26, 256 }
  0x3f   : > { %488 = vmatpush3.xpose.msra.mxu0 %v245_v5  ;;  %p607_p7 = scmp.lt.s32.totalorder %s371_s6, %s605_s26  ;;  %p608_p8 = scmp.lt.s32.totalorder %s606_s10, %s600_s22 }
  0x40   : > { %489 = vmatprep.subr.mxu0 %v669_v0  ;;  %p603_p5 = pneg %p602_p4 }
  0x41   : > { %p609_p9 = por %p608_p8, %p607_p7 }
  0x43   : > { %490 = vmatpush3.xpose.msra.mxu0 %v244_v6  ;;  %p610_p13 = pnand %p609_p9, %p603_p5 }
  0x44   : > { %491 = vmatprep.subr.mxu0 %v669_v0 }
  0x47   : > { %492 = vmatpush3.xpose.msra.mxu0 %v243_v7 }
  0x48   : > { %493 = vmatprep.subr.mxu0 %v669_v0 }
  0x4b   : > { %494 = vmatpush3.xpose.msra.mxu0 %v242_v8 }
  0x4c   : > { %495 = vmatprep.subr.mxu0 %v669_v0 }
  0x4f   : > { %496 = vmatpush3.xpose.msra.mxu0 %v241_v9 }
  0x50   : > { %497 = vmatprep.subr.mxu0 %v669_v0 }
  0x53   : > { %498 = vmatpush3.xpose.msra.mxu0 %v240_v10 }
  0x54   : > { %499 = vmatprep.subr.mxu0 %v669_v0 }
  0x57   : > { %500 = vmatpush3.xpose.msra.mxu0 %v239_v11 }
  0x58   : > { %501 = vmatprep.subr.mxu0 %v669_v0 }
  0x5b   : > { %502 = vmatpush3.xpose.msra.mxu0 %v238_v12 }
  0x5c   : > { %503 = vmatprep.subr.mxu0 %v669_v0 }
  0x5f   : > { %504 = vmatpush3.xpose.msra.mxu0 %v237_v13 }
  0x60   : > { %505 = vmatprep.subr.mxu0 %v669_v0 }
  0x63   : > { %506 = vmatpush3.xpose.msra.mxu0 %v236_v14 }
  0x64   : > { %507 = vmatprep.subr.mxu0 %v669_v0 }
  0x67   : > { %508 = vmatpush3.xpose.msra.mxu0 %v235_v15 }
  0x68   : > { %509 = vmatprep.subr.mxu0 %v669_v0 }
  0x6b   : > { %510 = vmatpush3.xpose.msra.mxu0 %v234_v16 }
  0x6c   : > { %511 = vmatprep.subr.mxu0 %v669_v0 }
  0x6f   : > { %512 = vmatpush3.xpose.msra.mxu0 %v233_v17 }
  0x70   : > { %513 = vmatprep.subr.mxu0 %v669_v0 }
  0x73   : > { %514 = vmatpush3.xpose.msra.mxu0 %v232_v18 }
  0x76   : > { %516 = vmatmul.mubr.f32.vlgmr.msra.gmra.mxu0 %v231_v19 }
  0xb3   : > { %v351_v36 = vpop.permute.xlu0 %350 }
  0xb4   : > { %vm352_vm3 = vcmp.eq.s32.totalorder %v347_v34, %v351_v36 }
 0x136   : > { %v314_v21 = vpop.f32.mrf.mxu0 }
 0x137   : > { %v325_v22 = vmul.f32 %v458_v20, %v314_v21 }
 0x138   : > { %v517_v23 = vpop.f32.mrf.mxu0 }
 0x139   : > { %v326_v24 = vmul.f32 %v325_v22, %v325_v22  ;;  %v337_v38 = vmul.f32 0.87758255, %v325_v22  ;;  %v459_v41 = vadd.f32 -0.23971277, %v325_v22  ;;  %vm340_vm4 = vcmp.gt.f32.partialorder %v325_v22, -0.87758255 }
 0x13b   : > { %v327_v25 = vsub.f32 1.0, %v326_v24 }
 0x13d   : > { %v328_v26 = vmax.f32 %v327_v25, 0.0 }
 0x13f   : > { %v329_v27 = vmin.f32 %v328_v26, 1.0 }
 0x141   : > { %570 = vrsqrt.f32 %v329_v27  ;;  %vm332_vm1 = vcmp.eq.f32.partialorder %v329_v27, inf  ;;  %v335_v33 = vand.u32 2147483648, %v329_v27  ;;  %vm334_vm2 = vcmp.eq.f32.partialorder %v329_v27, 0.0 }
 0x14e   : > { %v571_v30 = vpop.eup %570 }
 0x14f   : > { %v331_v32 = vmul.f32 %v571_v30, %v329_v27 }
 0x151   : > { %v333_v35 = vsel %vm332_vm1, %v329_v27, %v331_v32 }
 0x152   : > { %v336_v37 = vsel %vm334_vm2, %v335_v33, %v333_v35 }
 0x153   : > { %v338_v39 = vmul.f32 0.47942555, %v336_v37 }
 0x155   : > { %v339_v40 = vsub.f32 %v337_v38, %v338_v39 }
 0x157   : > { %v342_v42 = vsel %vm340_vm4, %v339_v40, %v459_v41 }
 0x158   : > { %v353_v43 = vsel %vm352_vm3, %v342_v42, %v325_v22 }
 0x159   : > { %v354_v44 = vmul.f32 30.0, %v353_v43 }
 0x15b   : > { %355 = vst [vmem:[%s226_s19] sm:$0xff] %v354_v44 }
 0x15c   : > { %613 = shalt.err (!%p610_p13)
}
 0x15d   : > { %s614_s11 = scalar_lea.hbm %s836_s14, 128  ;;  %s618_s23 = scalar_lea.hbm %s876_s4, 512 }
 0x15e   : > { %p615_p1 = scmp.ne.s32.totalorder %s836_s14, %s614_s11  ;;  %p619_p3 = scmp.lt.s32.totalorder %s836_s14, %s876_s4 }
 0x15f   : > { %p620_p6 = scmp.lt.s32.totalorder %s618_s23, %s614_s11 }
 0x160   : > { %p616_p0 = pnand %p615_p1, %p885_p12 }
 0x161   : > { %p621_p10 = por %p620_p6, %p619_p3 }
 0x162   : > { %p617_p2 = pneg %p616_p0 }
 0x164   : > { %p622_p11 = pnand %p621_p10, %p617_p2 }
 0x166   : > { %625 = shalt.err (!%p622_p11)
}
 0x167   : > { %520 = dma.vmem_to_hbm [thread:$0]  (%p885_p12), %s371_s6, 128, %s836_s14, %s357_s20  }
 0x168 PF: > { %p531_p4 = scmp.ge.s32.totalorder %s664_s18, 2  ;;  %s382_s30 = sand.u32 1, %s652_s15  }
 0x169   : > { %p886_p5 = scmp.ne.s32.totalorder %s882_s28, 0  ;;  %s383_s5 = scalar_lea.sflag [#allocation4], %s382_s30 }
 0x16b   : > { %p527_p7 = pnand %p531_p4, %p886_p5 }
 0x16d   : > { %p528_p8 = pneg %p527_p7 }
 0x16f   : > { %647 = dma.done.wait (%p528_p8), %s383_s5, 128  }
 0x170   : > { %649 = vsyncadd (%p528_p8), %s383_s5, 4294967168  ;;  %p17_p9 = scmp.ge.s32.totalorder %s723_s21, 6   ;;  %s887_s15 = smov %s656_s16 }
 0x171   : > { %s888_s16 = smov %s660_s17  ;;  %s889_s17 = smov %s735_s24 }
 0x172   : > { %s890_s18 = smov %s723_s21  ;;  %19 = sbr.rel (!%p17_p9) target bundleno = 5 (0x5), region = 84 }
 0x177   :  { %388 = vsyncpa [#allocation3], 1 }
 0x178   :  { %390 = vsyncpa [#allocation3 + $0x1], 1 }
 0x179   :  { %391 = vsyncpa [#allocation4], 1 }
 0x17a   :  { %393 = vsyncpa [#allocation4 + $0x1], 1 }

</bundles_post_ra>
